<compile_context>
chip_gen: v6e
topology: v6e:2x2x1
jax: 0.10.0
libtpu: 0.0.40
codegen_flags: <defaults>
</compile_context>

<pallas_src>
import functools

import jax
import jax.numpy as jnp
from jax.experimental import pallas as pl
from jax.experimental.pallas import tpu as pltpu

_SUB = 8      # f32 sublane multiple
_LANE = 128   # lane multiple


def _round_up(x, m):
    return ((x + m - 1) // m) * m


def _vmem_capacity_bytes():
    # Generation-aware physical VMEM (per core): v5e/v6e 128 MiB, v7x 64 MiB.
    try:
        info = pltpu.get_tpu_info()
        cap = getattr(info, "vmem_capacity_bytes", None)
        if cap:
            return int(cap)
    except Exception:
        pass
    return 64 * 1024 * 1024  # conservative fallback (v7x per-core VMEM)


def net_tsoftmax_kernel(x_ref, w_ref, b_ref, o_ref, *, inv_temp, emph, pad_lanes):
    # Grid = (batch tiles, K tiles). K (the in_features reduction) is the
    # trailing 'arbitrary' axis; o_ref (same block index for all k) is the
    # resident f32 accumulator, so no extra scratch is needed.
    k = pl.program_id(1)

    @pl.when(k == 0)
    def _():
        o_ref[...] = jnp.zeros_like(o_ref)

    o_ref[...] += jnp.dot(x_ref[...], w_ref[...],
                          preferred_element_type=jnp.float32)

    @pl.when(k == pl.num_programs(1) - 1)
    def _():
        # Net_tsoftmax.forward: apply_taylor_softmax(model(x) / temp)
        z = (o_ref[...] + b_ref[...]) * inv_temp
        t = 1.0 + z + 0.5 * (z * z)
        if emph != 1.0:              # static Python check; emph defaults to 1.0
            t = t ** emph
        s = jnp.sum(t, axis=-1, keepdims=True)
        if pad_lanes:
            # w and b are zero-padded in the padded lanes -> z = 0 -> t = 1
            # exactly, so correct the row sum with a constant instead of an
            # iota/cmp/select mask (3 fewer per-element VPU ops). The padded
            # output lanes hold 1/s and are sliced off / ignored by the wrapper.
            s = s - pad_lanes
        inv = pl.reciprocal(s, approx=True)   # EUP slot instead of a VPU divide
        inv = inv * (2.0 - s * inv)           # one Newton step -> full f32 accuracy
        o_ref[...] = (t * inv).astype(o_ref.dtype)


def net_tsoftmax(x, w, b, *, temp=1000.0, emph=1.0):
    B, IN = x.shape
    IN2, OUT = w.shape
    assert IN == IN2 and b.shape == (OUT,)
    bytes_f32 = 4

    # --- lane-dense output padding (unmasked vector stores) -----------------
    OUT_pad = _round_up(OUT, _LANE)
    if OUT_pad != OUT:
        w = jnp.pad(w, ((0, 0), (0, OUT_pad - OUT)))
        b = jnp.pad(b, (0, OUT_pad - OUT))
    b2d = b.reshape(1, OUT_pad)

    # --- generation-aware VMEM budget ---------------------------------------
    vmem_cap = _vmem_capacity_bytes()
    budget = int(vmem_cap * 0.75)            # headroom for compiler scratch

    # --- K (in_features) tiling: only split when the double-buffered weight
    #     would eat more than half the budget (large-IN fallback; v7x first).
    if 2 * IN * OUT_pad * bytes_f32 <= budget // 2 or IN < 2 * _LANE:
        tk = IN
        IN_pad = IN
    else:
        tk = max(_LANE,
                 ((budget // 2) // (2 * OUT_pad * bytes_f32)) // _LANE * _LANE)
        tk = min(tk, _round_up(IN, _LANE))
        IN_pad = _round_up(IN, tk)
    nk = IN_pad // tk
    if IN_pad != IN:
        x = jnp.pad(x, ((0, 0), (0, IN_pad - IN)))
        w = jnp.pad(w, ((0, IN_pad - IN), (0, 0)))

    # --- batch tile: biggest that fits the remaining budget ------------------
    w_resident = 2 * (tk * OUT_pad + _SUB * OUT_pad) * bytes_f32  # w + bias (dbl-buf)
    rem = max(budget - w_resident, 0)
    tb = rem // (2 * bytes_f32 * (tk + OUT_pad))   # x tile + out tile, dbl-buffered
    tb = max(_SUB, (tb // _SUB) * _SUB)
    tb = min(tb, _round_up(B, _SUB))
    if B > _SUB:
        # >= 2 grid steps on the 'parallel' axis so both v7x TensorCores work.
        tb = min(tb, _round_up(-(-B // 2), _SUB))
    tb = max(_SUB, (tb // _SUB) * _SUB)

    # pad the batch so the last tile never normalizes garbage rows (no NaN/Inf
    # even in discarded rows).
    B_pad = _round_up(B, tb)
    if B_pad != B:
        x = jnp.pad(x, ((0, B_pad - B), (0, 0)))
    nb = B_pad // tb

    # --- scoped VMEM limit: always set (v5e default is only 16 MiB), clamped
    #     under physical capacity so it can never exceed v7x's 64 MiB. --------
    vmem_est = (2 * tb * tk + 2 * tk * OUT_pad + 2 * _SUB * OUT_pad
                + 2 * tb * OUT_pad) * bytes_f32
    vmem_limit = int(min(vmem_cap - 2 * 1024 * 1024,
                         max(vmem_est * 1.5, 32 * 1024 * 1024)))

    kernel = functools.partial(
        net_tsoftmax_kernel,
        inv_temp=float(1.0 / temp),
        emph=float(emph),
        pad_lanes=float(OUT_pad - OUT),
    )

    # Weight traffic: the (0,0)/constant-k block index means it is DMA'd once
    # when K is not split; when K is split it is re-streamed per batch tile.
    w_traffic = IN_pad * OUT_pad * bytes_f32 * (nb if nk > 1 else 1)
    cost = pl.CostEstimate(
        flops=2 * B_pad * IN_pad * OUT_pad + 6 * B_pad * OUT_pad,
        transcendentals=0,
        bytes_accessed=(B_pad * IN_pad + _SUB * OUT_pad + B_pad * OUT_pad) * bytes_f32
        + w_traffic,
    )

    # TODO(synk): the wrapped `self.model` is arbitrary in the PyTorch module;
    # only a Linear inner model is fused here (other inner models would need
    # their own kernels feeding the same Taylor-softmax epilogue).
    out = pl.pallas_call(
        kernel,
        out_shape=jax.ShapeDtypeStruct((B_pad, OUT_pad), jnp.float32),
        grid_spec=pltpu.PrefetchScalarGridSpec(
            num_scalar_prefetch=0,
            grid=(nb, nk),
            in_specs=[
                pl.BlockSpec((tb, tk), lambda i, k: (i, k)),
                pl.BlockSpec((tk, OUT_pad), lambda i, k: (k, 0)),
                pl.BlockSpec((1, OUT_pad), lambda i, k: (0, 0)),
            ],
            out_specs=pl.BlockSpec((tb, OUT_pad), lambda i, k: (i, 0)),
        ),
        compiler_params=pltpu.CompilerParams(
            dimension_semantics=("parallel", "arbitrary"),
            vmem_limit_bytes=vmem_limit,
        ),
        cost_estimate=cost,
    )(x, w, b2d)

    # Slice away padding only when it actually exists (avoids an extra HBM
    # pass over the output in the common aligned case).
    if B_pad != B or OUT_pad != OUT:
        out = out[:B, :OUT]
    return out


if __name__ == "__main__":
    # Small deterministic setup: batch=8, in_features=32, out_features=128
    B, IN, OUT = 8, 32, 128
    TEMP = 1000.0
    key = jax.random.PRNGKey(0)
    kx, kw, kb = jax.random.split(key, 3)

    x = jax.random.normal(kx, (B, IN), dtype=jnp.float32)
    # deterministic "Linear" parameters (synthetic inner model, not a checkpoint)
    w = jax.random.normal(kw, (IN, OUT), dtype=jnp.float32) * (1.0 / jnp.sqrt(IN))
    b = jax.random.normal(kb, (OUT,), dtype=jnp.float32) * 0.01

    out = net_tsoftmax(x, w, b, temp=TEMP)
    jax.block_until_ready(out)

    # reference check in plain JAX (mirrors apply_taylor_softmax with emph=1.0)
    z = (x @ w + b) / TEMP
    t = 1.0 + z + 0.5 * z * z
    ref = t / jnp.sum(t, axis=1, keepdims=True)
    assert jnp.allclose(out, ref, atol=1e-5, rtol=1e-5), "mismatch vs reference"

    print("KERNEL_OK")
</pallas_src>

<mosaic_0001>
module attributes {stable_mosaic.version = 11 : i64} {
  func.func @net_tsoftmax_kernel(%arg0: i32, %arg1: i32, %arg2: memref<8x32xf32, #tpu.memory_space<vmem>>, %arg3: memref<32x128xf32, #tpu.memory_space<vmem>>, %arg4: memref<1x128xf32, #tpu.memory_space<vmem>>, %arg5: memref<8x128xf32, #tpu.memory_space<vmem>>) attributes {dimension_semantics = [#tpu.dimension_semantics<parallel>, #tpu.dimension_semantics<arbitrary>], iteration_bounds = array<i64: 1, 1>, scalar_prefetch = 0 : i64, scratch_operands = 0 : i64, tpu.core_type = #tpu.core_type<tc>, window_params = [{transform_indices = @transform_0, window_bounds = array<i64: 8, 32>}, {transform_indices = @transform_1, window_bounds = array<i64: 32, 128>}, {pipeline_mode = #tpu.pipeline_mode<synchronous>, transform_indices = @transform_2, window_bounds = array<i64: 1, 128>}, {transform_indices = @transform_3, window_bounds = array<i64: 8, 128>}]} {
    %c0_i32 = arith.constant 0 : i32
    %0 = arith.cmpi eq, %arg1, %c0_i32 : i32
    %1 = arith.extui %0 : i1 to i32
    %c0_i32_0 = arith.constant 0 : i32
    %2 = arith.cmpi ne, %1, %c0_i32_0 : i32
    scf.if %2 {
      %cst_10 = arith.constant 0.000000e+00 : f32
      %12 = vector.broadcast %cst_10 : f32 to vector<8x128xf32>
      %c0_11 = arith.constant 0 : index
      %c0_12 = arith.constant 0 : index
      %13 = vector.load %arg5[%c0_11, %c0_12] : memref<8x128xf32, #tpu.memory_space<vmem>>, vector<8x128xf32>
      tpu.vector_store %arg5[%c0_11, %c0_12], %12 {strides = array<i32>} : memref<8x128xf32, #tpu.memory_space<vmem>>, vector<8x128xf32>,
    } else {
    }
    %c0 = arith.constant 0 : index
    %c0_1 = arith.constant 0 : index
    %3 = vector.load %arg5[%c0, %c0_1] : memref<8x128xf32, #tpu.memory_space<vmem>>, vector<8x128xf32>
    %c0_2 = arith.constant 0 : index
    %c0_3 = arith.constant 0 : index
    %4 = vector.load %arg2[%c0_2, %c0_3] : memref<8x32xf32, #tpu.memory_space<vmem>>, vector<8x32xf32>
    %c0_4 = arith.constant 0 : index
    %c0_5 = arith.constant 0 : index
    %5 = vector.load %arg3[%c0_4, %c0_5] : memref<32x128xf32, #tpu.memory_space<vmem>>, vector<32x128xf32>
    %cst = arith.constant dense<0.000000e+00> : vector<8x128xf32>
    %6 = tpu.matmul %4, %5, %cst {dimension_numbers = #tpu.dot_dimension_numbers<[1], [0], [0], [1], [0, 0, 1, 1], [], []>} : vector<8x32xf32>, vector<32x128xf32>, vector<8x128xf32> -> vector<8x128xf32>
    %7 = arith.addf %3, %6 : vector<8x128xf32>
    %c0_6 = arith.constant 0 : index
    %c0_7 = arith.constant 0 : index
    %8 = vector.load %arg5[%c0_6, %c0_7] : memref<8x128xf32, #tpu.memory_space<vmem>>, vector<8x128xf32>
    tpu.vector_store %arg5[%c0_6, %c0_7], %7 {strides = array<i32>} : memref<8x128xf32, #tpu.memory_space<vmem>>, vector<8x128xf32>,
    %c0_i32_8 = arith.constant 0 : i32
    %9 = arith.cmpi eq, %arg1, %c0_i32_8 : i32
    %10 = arith.extui %9 : i1 to i32
    %c0_i32_9 = arith.constant 0 : i32
    %11 = arith.cmpi ne, %10, %c0_i32_9 : i32
    scf.if %11 {
      %c0_10 = arith.constant 0 : index
      %c0_11 = arith.constant 0 : index
      %12 = vector.load %arg5[%c0_10, %c0_11] : memref<8x128xf32, #tpu.memory_space<vmem>>, vector<8x128xf32>
      %c0_12 = arith.constant 0 : index
      %c0_13 = arith.constant 0 : index
      %13 = vector.load %arg4[%c0_12, %c0_13] : memref<1x128xf32, #tpu.memory_space<vmem>>, vector<1x128xf32>
      %14 = vector.broadcast %13 : vector<1x128xf32> to vector<8x128xf32>
      %15 = arith.addf %12, %14 : vector<8x128xf32>
      %cst_14 = arith.constant 1.000000e-03 : f32
      %16 = vector.broadcast %cst_14 : f32 to vector<8x128xf32>
      %17 = arith.mulf %15, %16 : vector<8x128xf32>
      %cst_15 = arith.constant 1.000000e+00 : f32
      %18 = vector.broadcast %cst_15 : f32 to vector<8x128xf32>
      %19 = arith.addf %18, %17 : vector<8x128xf32>
      %20 = arith.mulf %17, %17 : vector<8x128xf32>
      %cst_16 = arith.constant 5.000000e-01 : f32
      %21 = vector.broadcast %cst_16 : f32 to vector<8x128xf32>
      %22 = arith.mulf %21, %20 : vector<8x128xf32>
      %23 = arith.addf %19, %22 : vector<8x128xf32>
      %cst_17 = arith.constant dense<0.000000e+00> : vector<8xf32>
      %24 = vector.multi_reduction <add>, %23, %cst_17 [1] : vector<8x128xf32> to vector<8xf32>
      %25 = vector.shape_cast %24 : vector<8xf32> to vector<8x1xf32>
      %26 = tpu.reciprocal %25 {approx = true} : vector<8x1xf32> -> vector<8x1xf32>
      %27 = arith.mulf %25, %26 : vector<8x1xf32>
      %cst_18 = arith.constant 2.000000e+00 : f32
      %28 = vector.broadcast %cst_18 : f32 to vector<8x1xf32>
      %29 = arith.subf %28, %27 : vector<8x1xf32>
      %30 = arith.mulf %26, %29 : vector<8x1xf32>
      %31 = vector.broadcast %30 : vector<8x1xf32> to vector<8x128xf32>
      %32 = arith.mulf %23, %31 : vector<8x128xf32>
      %c0_19 = arith.constant 0 : index
      %c0_20 = arith.constant 0 : index
      %33 = vector.load %arg5[%c0_19, %c0_20] : memref<8x128xf32, #tpu.memory_space<vmem>>, vector<8x128xf32>
      tpu.vector_store %arg5[%c0_19, %c0_20], %32 {strides = array<i32>} : memref<8x128xf32, #tpu.memory_space<vmem>>, vector<8x128xf32>,
    } else {
    }
    return
  }
  func.func @transform_0(%arg0: i32, %arg1: i32) -> (i32, i32) {
    %c0_i32 = arith.constant 0 : i32
    return %arg0, %arg1 : i32, i32
  }
  func.func @transform_1(%arg0: i32, %arg1: i32) -> (i32, i32) {
    %c0_i32 = arith.constant 0 : i32
    %c0_i32_0 = arith.constant 0 : i32
    return %arg1, %c0_i32 : i32, i32
  }
  func.func @transform_2(%arg0: i32, %arg1: i32) -> (i32, i32) {
    %c0_i32 = arith.constant 0 : i32
    %c0_i32_0 = arith.constant 0 : i32
    %c0_i32_1 = arith.constant 0 : i32
    return %c0_i32, %c0_i32_0 : i32, i32
  }
  func.func @transform_3(%arg0: i32, %arg1: i32) -> (i32, i32) {
    %c0_i32 = arith.constant 0 : i32
    %c0_i32_0 = arith.constant 0 : i32
    return %arg0, %c0_i32 : i32, i32
  }
}

</mosaic_0001>

<bundles_post_ra>
// kernel: tpu_custom_call.1
= control target key start
LH: loop header
LB: loop body
LE: loop exit
PB: predicated region body
PF: predicated region fallthrough
CT: control target
= control target key end

     0   :  { %8 = vsyncpa [#allocation3], 0  ;;  %s301_s0 = inlined_call_operand.hbm [shape: f32[8,32], index: 0, kind: input, shape index: {}]   ;;  %s302_s1 = inlined_call_operand.hbm [shape: f32[32,128], index: 1, kind: input, shape index: {}]   ;;  %s303_s2 = inlined_call_operand.vmem [shape: f32[1,128], index: 2, kind: input, shape index: {}]   ;;  %s304_s3 = inlined_call_operand.hbm [shape: f32[8,128], index: 3, kind: output, shape index: {}]  }
   0x1   :  { %9 = vsyncpa [#allocation6], 0 }
   0x2   :  { %10 = vsyncpa [#allocation4], 0  ;;  %s262_s12 = smov [#allocation2]   ;;  %s263_s14 = smov [#allocation5]  }
   0x3   :  { %s17_s13 = sshll.u32 %s262_s12, 4  ;;  %s26_s15 = sshll.u32 %s263_s14, 4  ;;  %s18_s13 = int_to_ptr.vmem [resolvable:$true] %s17_s13  ;;  %s27_s15 = int_to_ptr.vmem [resolvable:$true] %s26_s15 }
   0x4   :  { %s204_s16 = scalar_lea.vmem %s18_s13, 128  ;;  %p209_p1 = scmp.lt.s32.totalorder %s18_s13, %s18_s13 }
   0x5   :  { %p205_p0 = scmp.ne.s32.totalorder %s18_s13, %s204_s16  ;;  %p210_p2 = scmp.lt.s32.totalorder %s204_s16, %s204_s16 }
   0x7   :  { %p211_p3 = por %p210_p2, %p209_p1 }
   0x9   :  { %p212_p4 = pnand %p211_p3, %p205_p0 }
   0xb   :  { %215 = shalt.err (!%p212_p4)
}
   0xc   :  { %20 = dma.hbm_to_vmem [thread:$0]  %s301_s0, 128, %s18_s13, [#allocation3]  }
   0xd   :  { %s224_s19 = scalar_lea.vmem %s27_s15, 512  ;;  %p229_p6 = scmp.lt.s32.totalorder %s27_s15, %s27_s15 }
   0xe   :  { %p225_p5 = scmp.ne.s32.totalorder %s27_s15, %s224_s19  ;;  %p230_p7 = scmp.lt.s32.totalorder %s224_s19, %s224_s19 }
  0x10   :  { %p231_p8 = por %p230_p7, %p229_p6 }
  0x12   :  { %p232_p9 = pnand %p231_p8, %p225_p5 }
  0x14   :  { %235 = shalt.err (!%p232_p9)
}
  0x15   :  { %s264_s20 = smov 128   ;;  %s265_s21 = smov 8  }
  0x16   :  { %32 = dma.hbm_to_vmem [thread:$0]  %s302_s1, 512, %s27_s15, [#allocation6], %s264_s20, %s264_s20, %s265_s21  }
  0x17   :  { %256 = dma.done.wait [#allocation3], 128  }
  0x18   :  { %257 = vsyncadd [#allocation3], 4294967168 }
  0x19   :  { %258 = dma.done.wait [#allocation6], 512  }
  0x1a   :  { %259 = vsyncadd [#allocation6], 4294966784  ;;  %v266_v0 = vmov 0.0   ;;  %vm267_vm0 = vmmov 0   ;;  %v51_v1 = vld [vmem:[#allocation5 + $0x18] sm:$0xff]  ;;  %v50_v2 = vld [vmem:[#allocation5 + $0x10] sm:$0xff] }
  0x1b   :  { %176 = vmatprep.subr.mxu0 %v266_v0  ;;  %184 = vmatprep.mubr.msk.f32.mxu0 %vm267_vm0, %v266_v0  ;;  %v49_v3 = vld [vmem:[#allocation5 + $0x8] sm:$0xff]  ;;  %v48_v4 = vld [vmem:[#allocation5] sm:$0xff]  ;;  %v47_v5 = vld [vmem:[#allocation2] sm:$0xff]  ;;  %vm52_vm1 = vcmask 261120   ;;  %s268_s24 = smov [#allocation7]  }
  0x1c   :  { %177 = vmatpush3.msra.mxu0 %v51_v1  ;;  %v170_v7 = vld [vmem:[%s303_s2] ss:$0 sm:$0xff]  ;;  %s159_s25 = sshll.u32 %s268_s24, 4  ;;  %s160_s25 = int_to_ptr.vmem [resolvable:$true] %s159_s25 }
  0x1d   :  { %178 = vmatprep.subr.mxu0 %v266_v0  ;;  %s236_s2 = scalar_lea.vmem %s160_s25, 128  ;;  %p241_p11 = scmp.lt.s32.totalorder %s160_s25, %s160_s25 }
  0x1e   :  { %179 = vmatpush3.msra.mxu0 %v50_v2  ;;  %p237_p10 = scmp.ne.s32.totalorder %s160_s25, %s236_s2  ;;  %p242_p12 = scmp.lt.s32.totalorder %s236_s2, %s236_s2 }
  0x1f   :  { %180 = vmatprep.subr.mxu0 %v266_v0 }
  0x20   :  { %181 = vmatpush3.msra.mxu0 %v49_v3  ;;  %p243_p13 = por %p242_p12, %p241_p11 }
  0x21   :  { %182 = vmatprep.subr.mxu0 %v266_v0 }
  0x22   :  { %183 = vmatpush3.msra.mxu0 %v48_v4  ;;  %p244_p0 = pnand %p243_p13, %p237_p10 }
  0x23   :  { %185 = vmatmul.mubr.msk.f32.vlgmr.msra.gmra.mxu0 %vm52_vm1, %v47_v5 }
  0xe3   :  { %v122_v6 = vpop.f32.mrf.mxu0 }
  0xe4   :  { %v139_v9 = vadd.f32 %v170_v7, %v122_v6 }
  0xe5   :  { %v186_v8 = vpop.f32.mrf.mxu0 }
  0xe6   :  { %v140_v10 = vmul.f32 0.001, %v139_v9 }
  0xe8   :  { %v142_v11 = vmul.f32 %v140_v10, %v140_v10  ;;  %v141_v12 = vadd.f32 1.0, %v140_v10 }
  0xea   :  { %v143_v13 = vmul.f32 0.5, %v142_v11 }
  0xec   :  { %v144_v14 = vadd.f32 %v143_v13, %v141_v12 }
  0xee   :  { %145 = vadd.xlane.f32.xlu0 %v144_v14 }
 0x177   :  { %v146_v15 = vpop.xlane.xlu0 %145 }
 0x178   :  { %194 = vrcp.f32 %v146_v15 }
 0x185   :  { %v195_v16 = vpop.eup %194 }
 0x186   :  { %v148_v17 = vmul.f32 %v195_v16, %v146_v15 }
 0x188   :  { %v149_v18 = vsub.f32 2.0, %v148_v17 }
 0x18a   :  { %v150_v19 = vmul.f32 %v195_v16, %v149_v18 }
 0x18c   :  { %v151_v20 = vmul.f32 %v150_v19, %v144_v14 }
 0x18e   :  { %152 = vst [vmem:[#allocation7] sm:$0xff] %v151_v20 }
 0x18f   :  { %247 = shalt.err (!%p244_p0)
}
 0x190   :  { %162 = dma.vmem_to_hbm [thread:$0]  %s160_s25, 128, %s304_s3, [#allocation4]  }
 0x191   :  { %260 = dma.done.wait [#allocation4], 128  }
 0x192   :  { %261 = vsyncadd [#allocation4], 4294967168 }
 0x193   :  { %166 = vsyncpa [#allocation3], 1 }
 0x194   :  { %167 = vsyncpa [#allocation6], 1 }
 0x195   :  { %168 = vsyncpa [#allocation4], 1 }

</bundles_post_ra>
